<compile_context>
chip_gen: v7x
topology: tpu7x:2x2x1
jax: 0.10.0
libtpu: 0.0.40
codegen_flags: <defaults>
</compile_context>

<pallas_src>
import functools
import math

import jax
import jax.numpy as jnp
from jax.experimental import pallas as pl
from jax.experimental.pallas import tpu as pltpu

BN_EPS = 1e-5
LANE = 128
_RESIDENT_XWL_LIMIT = 16 << 20  # max bytes of VMEM for a fully-resident XWl slab


def _round_up(x, m):
    return ((x + m - 1) // m) * m


def _choose_tiles(n, tile_m, tile_k):
    """Clamp tiles for small graphs and keep >=2 row-blocks for megacore."""
    n_al = _round_up(n, 256)
    tile_m = min(tile_m, n_al)
    tile_k = min(tile_k, n_al)
    n_pad = _round_up(n, math.lcm(tile_m, tile_k))
    if n_pad // tile_m < 2:
        # split the 'parallel' row axis so a 2-TC chip (v7x) doesn't idle one core
        tile_m = max(128, n_pad // 2)
    return tile_m, tile_k, n_pad


# ---------------- Pallas kernels ----------------

def _proj_kernel(x_ref, wl_ref, wr_ref, b_ref, xwl_ref, self_ref):
    """Per row-block projection: XWl = X @ Wl' (bf16 out), Self = X @ Wr' + b' (f32).

    Eval-mode BN is already folded into Wl'/Wr'/b' by the wrapper; operands are cast
    to bf16 in-kernel so the MXU runs native-rate with f32 accumulation.
    """
    x = x_ref[...].astype(jnp.bfloat16)
    wl = wl_ref[...].astype(jnp.bfloat16)
    wr = wr_ref[...].astype(jnp.bfloat16)
    xwl_ref[...] = jnp.dot(x, wl, preferred_element_type=jnp.float32).astype(
        xwl_ref.dtype)
    self_ref[...] = (jnp.dot(x, wr, preferred_element_type=jnp.float32)
                     + b_ref[...])


def _agg_kernel(a_ref, xwl_ref, self_ref, dinv_ref, o_ref, *,
                activation, c_valid, tile_k, resident):
    """Streamed aggregation: out = act((A_mask @ XWl) * deg_inv + Self).

    Grid = (row-blocks, K-blocks); K is the last ('arbitrary') axis.  The output block
    (constant index across K) is the f32 accumulator; the epilogue applies the exact
    per-row 1/deg mean scale, the self term and the activation in place.
    """
    k = pl.program_id(1)

    @pl.when(k == 0)
    def _():
        o_ref[...] = jnp.zeros_like(o_ref)

    if resident:
        off = pl.multiple_of(k * tile_k, tile_k)
        xwl = xwl_ref[pl.ds(off, tile_k), :]
    else:
        xwl = xwl_ref[...]
    a = a_ref[...].astype(jnp.bfloat16)          # 0/1 mask, exact in bf16
    o_ref[...] += jnp.dot(a, xwl, preferred_element_type=jnp.float32)

    @pl.when(k == pl.num_programs(1) - 1)
    def _():
        h = o_ref[...] * dinv_ref[...] + self_ref[...]
        if activation == "relu":
            # dropout is identity in eval mode
            # TODO(synk): training-mode dropout (RNG masking) not implemented.
            o_ref[...] = jnp.maximum(h, 0.0)
        else:  # log_softmax over the valid channel columns only
            col = jax.lax.broadcasted_iota(jnp.int32, h.shape, dimension=1)
            valid = col < c_valid
            h = jnp.where(valid, h, -1e30)
            m = jnp.max(h, axis=-1, keepdims=True)
            z = h - m
            lse = jnp.log(jnp.sum(jnp.exp(z), axis=-1, keepdims=True))
            o_ref[...] = jnp.where(valid, z - lse, 0.0)


# ---------------- wrappers ----------------

def sage_layer(a_i8, dinv_p, x_p, wl_p, wr_p, b_p, *, activation, c_valid,
               tile_m, tile_k):
    """One fused SAGE layer on padded operands.

    a_i8:   [N_pad, N_pad] int8 0/1 adjacency mask (zero-padded).
    dinv_p: [N_pad, 1] f32 per-row 1/deg (0 on pad rows).
    x_p:    [N_pad, Cin_pad] f32 node features (zero-padded).
    wl_p/wr_p: [Cin_pad, Cout_pad] f32 (BN folded, zero-padded). b_p: [1, Cout_pad].
    """
    n_pad, cin_pad = x_p.shape
    cout_pad = wl_p.shape[1]

    # 1) tiny projection kernel (row-blocked, 'parallel' axis -> both TCs on v7x).
    xwl, self_term = pl.pallas_call(
        _proj_kernel,
        out_shape=(jax.ShapeDtypeStruct((n_pad, cout_pad), jnp.bfloat16),
                   jax.ShapeDtypeStruct((n_pad, cout_pad), jnp.float32)),
        grid=(n_pad // tile_m,),
        in_specs=[pl.BlockSpec((tile_m, cin_pad), lambda i: (i, 0)),
                  pl.BlockSpec((cin_pad, cout_pad), lambda i: (0, 0)),
                  pl.BlockSpec((cin_pad, cout_pad), lambda i: (0, 0)),
                  pl.BlockSpec((1, cout_pad), lambda i: (0, 0))],
        out_specs=(pl.BlockSpec((tile_m, cout_pad), lambda i: (i, 0)),
                   pl.BlockSpec((tile_m, cout_pad), lambda i: (i, 0))),
        compiler_params=pltpu.CompilerParams(dimension_semantics=("parallel",)),
    )(x_p, wl_p, wr_p, b_p)

    # 2) streamed N^2 aggregation; XWl fully resident in VMEM when it fits, else
    #    streamed in (tile_k, cout_pad) slabs.
    resident = (n_pad * cout_pad * 2) <= _RESIDENT_XWL_LIMIT
    if resident:
        xwl_spec = pl.BlockSpec((n_pad, cout_pad), lambda i, k: (0, 0))
        cparams = pltpu.CompilerParams(
            dimension_semantics=("parallel", "arbitrary"),
            vmem_limit_bytes=32 << 20)   # resident slab (<=16 MiB) + tile buffers
    else:
        xwl_spec = pl.BlockSpec((tile_k, cout_pad), lambda i, k: (k, 0))
        cparams = pltpu.CompilerParams(
            dimension_semantics=("parallel", "arbitrary"))

    kernel = functools.partial(_agg_kernel, activation=activation,
                               c_valid=c_valid, tile_k=tile_k, resident=resident)
    out = pl.pallas_call(
        kernel,
        out_shape=jax.ShapeDtypeStruct((n_pad, cout_pad), jnp.float32),
        grid=(n_pad // tile_m, n_pad // tile_k),
        in_specs=[pl.BlockSpec((tile_m, tile_k), lambda i, k: (i, k)),
                  xwl_spec,
                  pl.BlockSpec((tile_m, cout_pad), lambda i, k: (i, 0)),
                  pl.BlockSpec((tile_m, 1), lambda i, k: (i, 0))],
        out_specs=pl.BlockSpec((tile_m, cout_pad), lambda i, k: (i, 0)),
        compiler_params=cparams,
    )(a_i8, xwl, self_term, dinv_p)
    return out


def _prepare_layer(wl_t, bl, wr_t, bn, cin_pad, cout_pad):
    """Fold eval-mode BatchNorm into the linear weights/bias and zero-pad to lane width."""
    if bn is not None:
        gamma, beta, mean, var = bn
        s = gamma * jax.lax.rsqrt(var + BN_EPS)        # [1, cout]
        wl_t = wl_t * s
        wr_t = wr_t * s
        bl = (bl - mean) * s + beta
    cin, cout = wl_t.shape
    wl_p = jnp.zeros((cin_pad, cout_pad), jnp.float32).at[:cin, :cout].set(wl_t)
    wr_p = jnp.zeros((cin_pad, cout_pad), jnp.float32).at[:cin, :cout].set(wr_t)
    b_p = jnp.zeros((1, cout_pad), jnp.float32).at[:, :cout].set(bl)
    return wl_p, wr_p, b_p


def sage_forward(x, adj, params, *, tile_m=1024, tile_k=1024):
    """x: [N, Cin] f32 features. adj: [N, N] dense 0/1 adjacency (adj_t).
    params: list of (wl_t [cin,cout], bl [1,cout], wr_t [cin,cout], bn|None)."""
    n, cin0 = x.shape
    tile_m, tile_k, n_pad = _choose_tiles(n, tile_m, tile_k)

    # A is built directly in its int8 streaming dtype (no f32 N^2 intermediate).
    adj_mask = (adj != 0)
    a_i8 = jnp.zeros((n_pad, n_pad), jnp.int8).at[:n, :n].set(
        adj_mask.astype(jnp.int8))
    deg = jnp.maximum(jnp.sum(adj_mask.astype(jnp.float32), axis=1), 1.0)
    dinv_p = jnp.zeros((n_pad, 1), jnp.float32).at[:n, 0].set(1.0 / deg)

    cin_pad = _round_up(cin0, LANE)
    h = jnp.zeros((n_pad, cin_pad), jnp.float32).at[:n, :cin0].set(x)

    num_layers = len(params)
    for li, (wl_t, bl, wr_t, bn) in enumerate(params):
        cout = wl_t.shape[1]
        cout_pad = _round_up(cout, LANE)
        wl_p, wr_p, b_p = _prepare_layer(wl_t, bl, wr_t, bn, h.shape[1], cout_pad)
        last = li == num_layers - 1
        # NOTE: padded rows carry relu(bias') garbage but never contaminate valid rows
        # (their adjacency columns are zero) and are sliced off below.
        h = sage_layer(a_i8, dinv_p, h, wl_p, wr_p, b_p,
                       activation="log_softmax" if last else "relu",
                       c_valid=cout, tile_m=tile_m, tile_k=tile_k)

    c_out_final = params[-1][0].shape[1]
    return h[:n, :c_out_final]


# ---------------- pure-JAX reference (PyTorch semantics) ----------------

def sage_reference(x, a_norm, params):
    h = x
    for (wl_t, bl, wr_t, bn) in params:
        agg = a_norm @ h
        z = agg @ wl_t + bl + h @ wr_t
        if bn is not None:
            gamma, beta, mean, var = bn
            z = (z - mean) * jax.lax.rsqrt(var + BN_EPS) * gamma + beta
            h = jnp.maximum(z, 0.0)          # dropout identity in eval mode
        else:
            h = jax.nn.log_softmax(z, axis=-1)
    return h


def init_params(key, in_channels, hidden_channels, out_channels, num_layers):
    params = []
    for layer in range(num_layers):
        cin = in_channels if layer == 0 else hidden_channels
        cout = out_channels if layer == num_layers - 1 else hidden_channels
        key, k1, k2, k3 = jax.random.split(key, 4)
        scale = 1.0 / jnp.sqrt(jnp.float32(cin))
        # weights stored already transposed ([cin, cout]) so kernels do x @ W
        wl_t = jax.random.normal(k1, (cin, cout), jnp.float32) * scale
        wr_t = jax.random.normal(k2, (cin, cout), jnp.float32) * scale
        bl = jax.random.normal(k3, (1, cout), jnp.float32) * 0.1
        if layer < num_layers - 1:
            key, kg, kb, km, kv = jax.random.split(key, 5)
            gamma = 1.0 + 0.1 * jax.random.normal(kg, (1, cout), jnp.float32)
            beta = 0.1 * jax.random.normal(kb, (1, cout), jnp.float32)
            rmean = 0.1 * jax.random.normal(km, (1, cout), jnp.float32)
            rvar = jnp.abs(jax.random.normal(kv, (1, cout), jnp.float32)) + 0.5
            bn = (gamma, beta, rmean, rvar)
        else:
            bn = None
        params.append((wl_t, bl, wr_t, bn))
    return params


if __name__ == "__main__":
    key = jax.random.PRNGKey(0)

    # small synthetic graph
    N = 200                # number of nodes
    IN_C = 8               # in_channels
    HID = 32               # hidden_channels
    OUT_C = 8              # out_channels
    NUM_LAYERS = 3
    DROPOUT = 0.5          # unused in eval mode

    key, kx, ka, kp = jax.random.split(key, 4)
    x = jax.random.normal(kx, (N, IN_C), jnp.float32)

    # random 0/1 adjacency (adj_t); reference uses the mean-normalized dense form
    adj = (jax.random.uniform(ka, (N, N)) < 0.3).astype(jnp.float32)
    deg = jnp.maximum(jnp.sum(adj, axis=1, keepdims=True), 1.0)
    a_norm = adj / deg

    params = init_params(kp, IN_C, HID, OUT_C, NUM_LAYERS)
    ref = sage_reference(x, a_norm, params)

    # run once with the auto-clamped large-tile defaults, once with small tiles to
    # exercise the multi-K-block accumulation path
    for tm, tk in ((1024, 1024), (128, 128)):
        out = sage_forward(x, adj, params, tile_m=tm, tile_k=tk)
        out = jax.block_until_ready(out)
        assert out.shape == (N, OUT_C)
        assert bool(jnp.all(jnp.isfinite(out)))
        # log_softmax rows should sum (in prob space) to ~1
        assert bool(jnp.allclose(jnp.sum(jnp.exp(out), axis=-1), 1.0, atol=1e-4))
        # match the f32 reference (bf16 projections -> loose tolerance)
        assert bool(jnp.allclose(out, ref, atol=1e-1))

    print("KERNEL_OK")
</pallas_src>

<mosaic_0001>
module attributes {stable_mosaic.version = 11 : i64} {
  func.func @_proj_kernel(%arg0: i32, %arg1: memref<128x128xf32, #tpu.memory_space<vmem>>, %arg2: memref<128x128xf32, #tpu.memory_space<vmem>>, %arg3: memref<128x128xf32, #tpu.memory_space<vmem>>, %arg4: memref<1x128xf32, #tpu.memory_space<vmem>>, %arg5: memref<128x128xbf16, #tpu.memory_space<vmem>>, %arg6: memref<128x128xf32, #tpu.memory_space<vmem>>) attributes {dimension_semantics = [#tpu.dimension_semantics<parallel>], iteration_bounds = array<i64: 2>, scalar_prefetch = 0 : i64, scratch_operands = 0 : i64, tpu.core_type = #tpu.core_type<tc>, window_params = [{transform_indices = @transform_0, window_bounds = array<i64: 128, 128>}, {pipeline_mode = #tpu.pipeline_mode<synchronous>, transform_indices = @transform_1, window_bounds = array<i64: 128, 128>}, {pipeline_mode = #tpu.pipeline_mode<synchronous>, transform_indices = @transform_2, window_bounds = array<i64: 128, 128>}, {pipeline_mode = #tpu.pipeline_mode<synchronous>, transform_indices = @transform_3, window_bounds = array<i64: 1, 128>}, {transform_indices = @transform_4, window_bounds = array<i64: 128, 128>}, {transform_indices = @transform_5, window_bounds = array<i64: 128, 128>}]} {
    %c0 = arith.constant 0 : index
    %c0_0 = arith.constant 0 : index
    %0 = vector.load %arg1[%c0, %c0_0] : memref<128x128xf32, #tpu.memory_space<vmem>>, vector<128x128xf32>
    %1 = arith.truncf %0 : vector<128x128xf32> to vector<128x128xbf16>
    %c0_1 = arith.constant 0 : index
    %c0_2 = arith.constant 0 : index
    %2 = vector.load %arg2[%c0_1, %c0_2] : memref<128x128xf32, #tpu.memory_space<vmem>>, vector<128x128xf32>
    %3 = arith.truncf %2 : vector<128x128xf32> to vector<128x128xbf16>
    %c0_3 = arith.constant 0 : index
    %c0_4 = arith.constant 0 : index
    %4 = vector.load %arg3[%c0_3, %c0_4] : memref<128x128xf32, #tpu.memory_space<vmem>>, vector<128x128xf32>
    %5 = arith.truncf %4 : vector<128x128xf32> to vector<128x128xbf16>
    %cst = arith.constant dense<0.000000e+00> : vector<128x128xf32>
    %6 = tpu.matmul %1, %3, %cst {dimension_numbers = #tpu.dot_dimension_numbers<[1], [0], [0], [1], [0, 0, 1, 1], [], []>} : vector<128x128xbf16>, vector<128x128xbf16>, vector<128x128xf32> -> vector<128x128xf32>
    %7 = arith.truncf %6 : vector<128x128xf32> to vector<128x128xbf16>
    %c0_5 = arith.constant 0 : index
    %c0_6 = arith.constant 0 : index
    %8 = vector.load %arg5[%c0_5, %c0_6] : memref<128x128xbf16, #tpu.memory_space<vmem>>, vector<128x128xbf16>
    tpu.vector_store %arg5[%c0_5, %c0_6], %7 {strides = array<i32>} : memref<128x128xbf16, #tpu.memory_space<vmem>>, vector<128x128xbf16>,
    %cst_7 = arith.constant dense<0.000000e+00> : vector<128x128xf32>
    %9 = tpu.matmul %1, %5, %cst_7 {dimension_numbers = #tpu.dot_dimension_numbers<[1], [0], [0], [1], [0, 0, 1, 1], [], []>} : vector<128x128xbf16>, vector<128x128xbf16>, vector<128x128xf32> -> vector<128x128xf32>
    %c0_8 = arith.constant 0 : index
    %c0_9 = arith.constant 0 : index
    %10 = vector.load %arg4[%c0_8, %c0_9] : memref<1x128xf32, #tpu.memory_space<vmem>>, vector<1x128xf32>
    %11 = vector.broadcast %10 : vector<1x128xf32> to vector<128x128xf32>
    %12 = arith.addf %9, %11 : vector<128x128xf32>
    %c0_10 = arith.constant 0 : index
    %c0_11 = arith.constant 0 : index
    %13 = vector.load %arg6[%c0_10, %c0_11] : memref<128x128xf32, #tpu.memory_space<vmem>>, vector<128x128xf32>
    tpu.vector_store %arg6[%c0_10, %c0_11], %12 {strides = array<i32>} : memref<128x128xf32, #tpu.memory_space<vmem>>, vector<128x128xf32>,
    return
  }
  func.func @transform_0(%arg0: i32) -> (i32, i32) {
    %c0_i32 = arith.constant 0 : i32
    %c0_i32_0 = arith.constant 0 : i32
    return %arg0, %c0_i32 : i32, i32
  }
  func.func @transform_1(%arg0: i32) -> (i32, i32) {
    %c0_i32 = arith.constant 0 : i32
    %c0_i32_0 = arith.constant 0 : i32
    %c0_i32_1 = arith.constant 0 : i32
    return %c0_i32, %c0_i32_0 : i32, i32
  }
  func.func @transform_2(%arg0: i32) -> (i32, i32) {
    %c0_i32 = arith.constant 0 : i32
    %c0_i32_0 = arith.constant 0 : i32
    %c0_i32_1 = arith.constant 0 : i32
    return %c0_i32, %c0_i32_0 : i32, i32
  }
  func.func @transform_3(%arg0: i32) -> (i32, i32) {
    %c0_i32 = arith.constant 0 : i32
    %c0_i32_0 = arith.constant 0 : i32
    %c0_i32_1 = arith.constant 0 : i32
    return %c0_i32, %c0_i32_0 : i32, i32
  }
  func.func @transform_4(%arg0: i32) -> (i32, i32) {
    %c0_i32 = arith.constant 0 : i32
    %c0_i32_0 = arith.constant 0 : i32
    return %arg0, %c0_i32 : i32, i32
  }
  func.func @transform_5(%arg0: i32) -> (i32, i32) {
    %c0_i32 = arith.constant 0 : i32
    %c0_i32_0 = arith.constant 0 : i32
    return %arg0, %c0_i32 : i32, i32
  }
}

</mosaic_0001>

<bundles_post_ra>
// kernel: tpu_custom_call.1
= control target key start
LH: loop header
LB: loop body
LE: loop exit
PB: predicated region body
PF: predicated region fallthrough
CT: control target
= control target key end

     0   :  { %11 = vsyncpa [#allocation3], 0  ;;  %s1674_s0 = inlined_call_operand.hbm [shape: f32[256,128], index: 0, kind: input, shape index: {}]   ;;  %s1675_s1 = inlined_call_operand.hbm [shape: f32[128,128], index: 1, kind: input, shape index: {}]   ;;  %s1676_s2 = inlined_call_operand.hbm [shape: f32[128,128], index: 2, kind: input, shape index: {}]   ;;  %s1677_s3 = inlined_call_operand.vmem [shape: f32[1,128], index: 3, kind: input, shape index: {}]   ;;  %s1678_s4 = inlined_call_operand.hbm [shape: bf16[256,128], index: 4, kind: output, shape index: {0}]   ;;  %s1679_s5 = inlined_call_operand.hbm [shape: f32[256,128], index: 5, kind: output, shape index: {1}]  }
   0x1   :  { %13 = vsyncpa [#allocation3 + $0x1], 0 }
   0x2   :  { %14 = vsyncpa [#allocation6], 0 }
   0x3   :  { %15 = vsyncpa [#allocation4], 0 }
   0x4   :  { %17 = vsyncpa [#allocation4 + $0x1], 0 }
   0x5   :  { %18 = vsyncpa [#allocation10], 0 }
   0x6   :  { %20 = vsyncpa [#allocation10 + $0x1], 0  ;;  %s1325_s18 = smov 0   ;;  %s1327_s19 = smov 0  }
   0x7   :  { %s1329_s20 = smov 0   ;;  %s1331_s21 = smov 0  }
   0x8 LB: > { %s1346_s22 = sadd.s32 4294967295, %s1282_s21   ;;  %s815_s23 = sadd.s32 4294967294, %s1282_s21   ;;  %s1282_s21 = sphi %s1331_s21, %s1699_s21   ;;  %s1278_s20 = sphi %s1329_s20, %s1698_s20   ;;  %s1274_s19 = sphi %s1327_s19, %s1697_s19   ;;  %s1270_s18 = sphi %s1325_s18, %s1696_s18  }
   0x9   : > { %p46_p0 = scmp.ne.s32.totalorder %s1274_s19, %s1270_s18  ;;  %p1680_p1 = scmp.eq.s32.totalorder %s1346_s22, 0 }
   0xa   : > { %p139_p3 = scmp.eq.s32.totalorder %s815_s23, 1  ;;  %p816_p5 = scmp.ge.s32.totalorder %s1282_s21, 1 }
   0xb   : > { %p1355_p4 = por %p1680_p1, %p46_p0  ;;  %p172_p7 = scmp.lt.s32.totalorder %s1282_s21, 3 }
   0xc   : > { %p1360_p6 = por %p139_p3, %p46_p0  ;;  %s1284_s27 = smov [#allocation5]  }
   0xd   : > { %s1683_s24 = scalar_select %p1355_p4, 1, 0 }
   0xe   : > { %s1684_s25 = scalar_select %p1360_p6, 1, 0 }
   0xf   : > { %p1365_p8 = pnand %p816_p5, %p172_p7  ;;  %s184_s28 = sshll.u32 %s1284_s27, 4  ;;  %s1369_s28 = int_to_ptr.vmem [resolvable:$true] %s184_s28 }
  0x10   : > { %s1285_s30 = smov [#allocation7]   ;;  %s1094_s9 = scalar_lea.hbm %s1675_s1, 2048 }
  0x11   : > { %p1030_p9 = pneg %p1365_p8  ;;  %s197_s6 = sshll.u32 %s1285_s30, 4  ;;  %s1380_s6 = int_to_ptr.vmem [resolvable:$true] %s197_s6 }
  0x12   : > { %p1095_p12 = scmp.ne.s32.totalorder %s1675_s1, %s1094_s9  ;;  %p1101_p5 = scmp.lt.u32.totalorder %s1094_s9, %s1675_s1 }
  0x13   : > { %p1376_p11 = pnand %p1030_p9, %p1680_p1 }
  0x15   : > { %p1096_p13 = pneg %p1376_p11 }
  0x17   : > { %p1097_p0 = pnand %p1096_p13, %p1095_p12 }
  0x19   : > { %p1098_p3 = pneg %p1097_p0 }
  0x1b   : > { %p1103_p7 = pnand %p1101_p5, %p1098_p3 }
  0x1d   : > { %1106 = shalt.err (!%p1103_p7)
}
  0x1e   : > { %s1107_s14 = scalar_lea.vmem %s1369_s28, 2048  ;;  %p1115_p2 = scmp.lt.s32.totalorder %s1369_s28, %s1369_s28 }
  0x1f   : > { %p1108_p9 = scmp.ne.s32.totalorder %s1369_s28, %s1107_s14  ;;  %p1116_p12 = scmp.lt.s32.totalorder %s1107_s14, %s1107_s14 }
  0x21   : > { %p1110_p10 = pnand %p1108_p9, %p1096_p13  ;;  %p1117_p0 = por %p1116_p12, %p1115_p2 }
  0x23   : > { %p1111_p1 = pneg %p1110_p10 }
  0x25   : > { %p1118_p6 = pnand %p1117_p0, %p1111_p1 }
  0x27   : > { %1121 = shalt.err (!%p1118_p6)
}
  0x28   : > { %s1286_s15 = smov 128   ;;  %s1287_s16 = smov 8  }
  0x29   : > { %1033 = dma.hbm_to_vmem [thread:$0]  (!%p1376_p11), %s1675_s1, 2048, %s1369_s28, [#allocation6], %s1286_s15, %s1286_s15, %s1287_s16  }
  0x2a   : > { %s1122_s7 = scalar_lea.hbm %s1676_s2, 2048 }
  0x2b   : > { %p1123_p1 = scmp.ne.s32.totalorder %s1676_s2, %s1122_s7  ;;  %p1129_p10 = scmp.lt.u32.totalorder %s1122_s7, %s1676_s2 }
  0x2d   : > { %p1125_p2 = pnand %p1123_p1, %p1096_p13 }
  0x2f   : > { %p1126_p6 = pneg %p1125_p2 }
  0x31   : > { %p1131_p3 = pnand %p1129_p10, %p1126_p6 }
  0x33   : > { %1134 = shalt.err (!%p1131_p3)
}
  0x34   : > { %s1135_s28 = scalar_lea.vmem %s1380_s6, 2048  ;;  %p1143_p12 = scmp.lt.s32.totalorder %s1380_s6, %s1380_s6 }
  0x35   : > { %p1136_p5 = scmp.ne.s32.totalorder %s1380_s6, %s1135_s28  ;;  %p1144_p0 = scmp.lt.s32.totalorder %s1135_s28, %s1135_s28 }
  0x37   : > { %p1138_p7 = pnand %p1136_p5, %p1096_p13  ;;  %p1145_p1 = por %p1144_p0, %p1143_p12 }
  0x39   : > { %p1139_p9 = pneg %p1138_p7 }
  0x3b   : > { %p1146_p2 = pnand %p1145_p1, %p1139_p9 }
  0x3d   : > { %1149 = shalt.err (!%p1146_p2)
}
  0x3e   : > { %1036 = dma.hbm_to_vmem [thread:$0]  (!%p1376_p11), %s1676_s2, 2048, %s1380_s6, [#allocation6], %s1286_s15, %s1286_s15, %s1287_s16  }
  0x3f   : > { %s1441_s29 = sadd.s32 1, %s1282_s21   ;;  %s33_s14 = sadd.s32 1, %s1278_s20 }
  0x40   : > { %s30_s17 = ssub.s32 %s1282_s21, %s1441_s29  ;;  %p40_p13 = scmp.ne.s32.totalorder %s1278_s20, %s1274_s19 }
  0x41   : > { %p31_p6 = scmp.eq.s32.totalorder %s30_s17, 0  ;;  %p41_p10 = scmp.eq.s32.totalorder %s1282_s21, 0 }
  0x42   : > { %p1687_p3 = scmp.eq.s32.totalorder %s1346_s22, 1  ;;  %p1050_p7 = scmp.lt.s32.totalorder %s1282_s21, 2 }
  0x43   : > { %s1457_s27 = scalar_select %p31_p6, %s1278_s20, %s33_s14  }
  0x44   : > { %p1451_p5 = por %p1687_p3, %p40_p13  ;;  %p42_p9 = por %p41_p10, %p40_p13 }
  0x45   : > { %s214_s30 = sand.u32 1, %s1278_s20   ;;  %s854_s6 = sshll.u32 %s1282_s21, 11 }
  0x46   : > { %s1688_s23 = scalar_select %p1451_p5, 1, 0 }
  0x47   : > { %s820_s7 = sshll.u32 %s214_s30, 7  ;;  %s1464_s10 = scalar_lea.hbm %s1674_s0, %s854_s6 }
  0x48   : > { %s218_s11 = scalar_lea.vmem [#allocation2], %s820_s7  ;;  %p1468_p11 = pnand %p1050_p7, %p42_p9 }
  0x49   : > { %s225_s28 = sshll.u32 %s218_s11, 4  ;;  %s1472_s13 = scalar_lea.sflag [#allocation3], %s214_s30  ;;  %s1466_s28 = int_to_ptr.vmem [resolvable:$true] %s225_s28 }
  0x4a   : > { %s1150_s14 = scalar_lea.hbm %s1464_s10, 2048  ;;  %p1152_p0 = pneg %p1468_p11 }
  0x4b   : > { %p1151_p12 = scmp.ne.s32.totalorder %s1464_s10, %s1150_s14  ;;  %s1155_s6 = scalar_lea.hbm %s1674_s0, 4096 }
  0x4c   : > { %p1156_p13 = scmp.lt.u32.totalorder %s1464_s10, %s1674_s0  ;;  %p1157_p6 = scmp.lt.u32.totalorder %s1155_s6, %s1150_s14 }
  0x4d   : > { %p1153_p1 = pnand %p1152_p0, %p1151_p12  ;;  %p1159_p3 = scmp.lt.u32.totalorder %s1150_s14, %s1464_s10 }
  0x4e   : > { %p1158_p10 = por %p1157_p6, %p1156_p13 }
  0x4f   : > { %p1154_p2 = pneg %p1153_p1 }
  0x50   : > { %p1160_p7 = por %p1159_p3, %p1158_p10 }
  0x52   : > { %p1161_p9 = pnand %p1160_p7, %p1154_p2 }
  0x54   : > { %1164 = shalt.err (!%p1161_p9)
}
  0x55   : > { %s1165_s30 = scalar_lea.vmem %s1466_s28, 2048  ;;  %s1288_s11 = smov [#allocation2]  }
  0x56   : > { %p1166_p12 = scmp.ne.s32.totalorder %s1466_s28, %s1165_s30  ;;  %s1170_s17 = sshll.u32 %s1288_s11, 4  ;;  %s1171_s17 = int_to_ptr.vmem [resolvable:$false] %s1170_s17 }
  0x57   : > { %s1172_s7 = scalar_lea.vmem %s1171_s17, 4096  ;;  %p1173_p4 = scmp.lt.s32.totalorder %s1466_s28, %s1171_s17 }
  0x58   : > { %p1168_p1 = pnand %p1166_p12, %p1152_p0  ;;  %p1174_p13 = scmp.lt.s32.totalorder %s1172_s7, %s1165_s30 }
  0x5a   : > { %p1169_p5 = pneg %p1168_p1  ;;  %p1175_p6 = por %p1174_p13, %p1173_p4 }
  0x5c   : > { %p1176_p10 = pnand %p1175_p6, %p1169_p5 }
  0x5e   : > { %1179 = shalt.err (!%p1176_p10)
}
  0x5f   : > { %1040 = dma.hbm_to_vmem [thread:$0]  (!%p1468_p11), %s1464_s10, 2048, %s1466_s28, %s1472_s13, %s1286_s15, %s1286_s15, %s1287_s16  }
  0x60   : > { %237 = sbr.rel (%p1365_p8) target bundleno = 423 (0x1a7), region = 36  ;;  %s1506_s14 = sand.u32 (!%p1365_p8), 1, %s1274_s19  }
  0x61   : > { %s824_s6 = sshll.u32 (!%p1365_p8), %s1506_s14, 7  ;;  %s240_s8 = scalar_lea.sflag (!%p1365_p8), [#allocation3], %s1506_s14 }
  0x62   : > { %s1512_s12 = scalar_lea.vmem (!%p1365_p8), [#allocation2], %s824_s6  ;;  %p1690_p4 = scmp.ne.s32.totalorder (!%p1365_p8), %s1683_s24, 0 }
  0x67   : > { %1253 = dma.done.wait (%p1690_p4), %s240_s8, 2048  }
  0x68   : > { %1255 = vsyncadd (%p1690_p4), %s240_s8, 4294965248  ;;  %p1691_p5 = scmp.eq.s32.totalorder %s1346_s22, 0 }
  0x6a   : > { %1257 = dma.done.wait (%p1691_p5), [#allocation6], 4096   ;;  %p1692_p8 = pmov %p1691_p5 }
  0x6b   : > { %v311_v0 = vld [vmem:[#allocation5] sm:$0xff]  ;;  %v312_v1 = vld [vmem:[#allocation5 + $0x8] sm:$0xff]  ;;  %v313_v5 = vld [vmem:[#allocation5 + $0x10] sm:$0xff]  ;;  %s827_s15 = sshll.u32 %s1506_s14, 6  ;;  %s1548_s16 = scalar_lea.vmem [#allocation9], %s824_s6 }
  0x6c   : > { %1259 = vsyncadd (%p1692_p8), [#allocation6], 4294963200  ;;  %v335_v2 = vld [vmem:[#allocation7] sm:$0xff]  ;;  %v327_v3 = vpack.c.bf16 %v312_v1, %v311_v0  ;;  %v336_v4 = vld [vmem:[#allocation7 + $0x8] sm:$0xff]  ;;  %s1553_s10 = scalar_lea.vmem [#allocation8], %s827_s15  ;;  %s871_s13 = sshll.u32 %s1346_s22, 10 }
  0x6d   : > { %v314_v6 = vld [vmem:[#allocation5 + $0x18] sm:$0xff]  ;;  %v351_v7 = vpack.c.bf16 %v336_v4, %v335_v2  ;;  %v337_v9 = vld [vmem:[#allocation7 + $0x10] sm:$0xff]  ;;  %v315_v11 = vld [vmem:[#allocation5 + $0x20] sm:$0xff]  ;;  %s675_s28 = sshll.u32 %s1553_s10, 4  ;;  %s872_s9 = sshll.u32 %s1346_s22, 11  ;;  %s1582_s28 = int_to_ptr.vmem [resolvable:$true] %s675_s28 }
  0x6e   : > { %v328_v8 = vpack.c.bf16 %v314_v6, %v313_v5  ;;  %v338_v10 = vld [vmem:[#allocation7 + $0x18] sm:$0xff]  ;;  %952 = vmatprep.subr.bf16.mxu0 %v327_v3  ;;  %v316_v13 = vld [vmem:[#allocation5 + $0x28] sm:$0xff]  ;;  %v339_v14 = vld [vmem:[#allocation7 + $0x20] sm:$0xff]  ;;  %s1588_s17 = scalar_lea.hbm %s1678_s4, %s871_s13  ;;  %s691_s7 = sshll.u32 %s1548_s16, 4  ;;  %s1603_s7 = int_to_ptr.vmem [resolvable:$true] %s691_s7 }
  0x6f   : > { %v352_v12 = vpack.c.bf16 %v338_v10, %v337_v9  ;;  %v340_v15 = vld [vmem:[#allocation7 + $0x28] sm:$0xff]  ;;  %984 = vmatprep.subr.bf16.mxu1 %v351_v7  ;;  %953 = vmatpush3.bf16.msra.mxu0 %v327_v3  ;;  %v329_v16 = vpack.c.bf16 %v316_v13, %v315_v11  ;;  %v317_v18 = vld [vmem:[#allocation5 + $0x30] sm:$0xff]  ;;  %v318_v19 = vld [vmem:[#allocation5 + $0x38] sm:$0xff]  ;;  %s1598_s8 = scalar_lea.hbm %s1679_s5, %s872_s9  ;;  %s1180_s24 = scalar_lea.vmem %s1582_s28, 1024 }
  0x70   : > { %985 = vmatpush3.bf16.msra.mxu1 %v351_v7  ;;  %954 = vmatprep.subr.bf16.mxu0 %v328_v8  ;;  %v353_v17 = vpack.c.bf16 %v340_v15, %v339_v14  ;;  %v341_v20 = vld [vmem:[#allocation7 + $0x30] sm:$0xff]  ;;  %v342_v21 = vld [vmem:[#allocation7 + $0x38] sm:$0xff]  ;;  %v330_v22 = vpack.c.bf16 %v318_v19, %v317_v18  ;;  %v319_v24 = vld [vmem:[#allocation5 + $0x40] sm:$0xff]  ;;  %p1181_p11 = scmp.ne.s32.totalorder %s1582_s28, %s1180_s24  ;;  %p1693_p0 = scmp.ne.s32.totalorder %s1688_s23, 0 }
  0x71   : > { %986 = vmatprep.subr.bf16.mxu1 %v352_v12  ;;  %v354_v23 = vpack.c.bf16 %v342_v21, %v341_v20  ;;  %v320_v25 = vld [vmem:[#allocation5 + $0x48] sm:$0xff]  ;;  %v287_v26 = vld [vmem:[%s1512_s12] sm:$0xff]  ;;  %v321_v33 = vld [vmem:[#allocation5 + $0x50] sm:$0xff]  ;;  %s1289_s26 = smov [#allocation8]  }
  0x72   : > { %v343_v27 = vld [vmem:[#allocation7 + $0x40] sm:$0xff]  ;;  %v344_v28 = vld [vmem:[#allocation7 + $0x48] sm:$0xff]  ;;  %v331_v31 = vpack.c.bf16 %v320_v25, %v319_v24  ;;  %v322_v34 = vld [vmem:[#allocation5 + $0x58] sm:$0xff]  ;;  %p1182_p2 = pnand %p1181_p11, %p1693_p0  ;;  %s1184_s15 = sshll.u32 %s1289_s26, 4  ;;  %s1185_s15 = int_to_ptr.vmem [resolvable:$false] %s1184_s15 }
  0x73   : > { %955 = vmatpush3.bf16.msra.mxu0 %v328_v8  ;;  %v288_v29 = vld [vmem:[%s1512_s12 + $0x8] sm:$0xff]  ;;  %v355_v32 = vpack.c.bf16 %v344_v28, %v343_v27  ;;  %v345_v35 = vld [vmem:[#allocation7 + $0x50] sm:$0xff]  ;;  %v346_v36 = vld [vmem:[#allocation7 + $0x58] sm:$0xff]  ;;  %v332_v37 = vpack.c.bf16 %v322_v34, %v321_v33  ;;  %s1186_s13 = scalar_lea.vmem %s1185_s15, 2048  ;;  %p1187_p7 = scmp.lt.s32.totalorder %s1582_s28, %s1185_s15 }
  0x74   : > { %987 = vmatpush3.bf16.msra.mxu1 %v352_v12  ;;  %956 = vmatprep.subr.bf16.mxu0 %v329_v16  ;;  %v303_v30 = vpack.c.bf16 %v288_v29, %v287_v26  ;;  %v356_v38 = vpack.c.bf16 %v346_v36, %v345_v35  ;;  %v323_v39 = vld [vmem:[#allocation5 + $0x60] sm:$0xff]  ;;  %v324_v40 = vld [vmem:[#allocation5 + $0x68] sm:$0xff]  ;;  %v325_v45 = vld [vmem:[#allocation5 + $0x70] sm:$0xff]  ;;  %p1183_p3 = pneg %p1182_p2  ;;  %p1188_p9 = scmp.lt.s32.totalorder %s1186_s13, %s1180_s24 }
  0x75   : > { %988 = vmatprep.subr.bf16.mxu1 %v353_v17  ;;  %v347_v41 = vld [vmem:[#allocation7 + $0x60] sm:$0xff]  ;;  %v348_v42 = vld [vmem:[#allocation7 + $0x68] sm:$0xff]  ;;  %v333_v43 = vpack.c.bf16 %v324_v40, %v323_v39  ;;  %v326_v46 = vld [vmem:[#allocation5 + $0x78] sm:$0xff] }
  0x76   : > { %968 = vmatprep.mubr.bf16.mxu0 %v303_v30  ;;  %1000 = vmatprep.mubr.bf16.mxu1 %v303_v30  ;;  %v357_v44 = vpack.c.bf16 %v348_v42, %v347_v41  ;;  %v349_v47 = vld [vmem:[#allocation7 + $0x70] sm:$0xff]  ;;  %v350_v48 = vld [vmem:[#allocation7 + $0x78] sm:$0xff]  ;;  %v334_v49 = vpack.c.bf16 %v326_v46, %v325_v45  ;;  %v291_v53 = vld [vmem:[%s1512_s12 + $0x20] sm:$0xff]  ;;  %p1189_p12 = por %p1188_p9, %p1187_p7 }
  0x77   : > { %957 = vmatpush3.bf16.msra.mxu0 %v329_v16  ;;  %v358_v50 = vpack.c.bf16 %v350_v48, %v349_v47  ;;  %v289_v51 = vld [vmem:[%s1512_s12 + $0x10] sm:$0xff]  ;;  %v290_v52 = vld [vmem:[%s1512_s12 + $0x18] sm:$0xff]  ;;  %v292_v54 = vld [vmem:[%s1512_s12 + $0x28] sm:$0xff] }
  0x78   : > { %989 = vmatpush3.bf16.msra.mxu1 %v353_v17  ;;  %958 = vmatprep.subr.bf16.mxu0 %v330_v22  ;;  %v304_v55 = vpack.c.bf16 %v290_v52, %v289_v51  ;;  %v305_v56 = vpack.c.bf16 %v292_v54, %v291_v53  ;;  %v293_v57 = vld [vmem:[%s1512_s12 + $0x30] sm:$0xff]  ;;  %v294_v58 = vld [vmem:[%s1512_s12 + $0x38] sm:$0xff]  ;;  %v295_v59 = vld [vmem:[%s1512_s12 + $0x40] sm:$0xff]  ;;  %p1190_p1 = pnand %p1189_p12, %p1183_p3 }
  0x79   : > { %990 = vmatprep.subr.bf16.mxu1 %v354_v23  ;;  %v296_v60 = vld [vmem:[%s1512_s12 + $0x48] sm:$0xff]  ;;  %v306_v61 = vpack.c.bf16 %v294_v58, %v293_v57  ;;  %v297_v63 = vld [vmem:[%s1512_s12 + $0x50] sm:$0xff]  ;;  %v298_v0 = vld [vmem:[%s1512_s12 + $0x58] sm:$0xff] }
  0x7a   : > { %v307_v62 = vpack.c.bf16 %v296_v60, %v295_v59  ;;  %v299_v1 = vld [vmem:[%s1512_s12 + $0x60] sm:$0xff]  ;;  %v300_v2 = vld [vmem:[%s1512_s12 + $0x68] sm:$0xff]  ;;  %v308_v3 = vpack.c.bf16 %v298_v0, %v297_v63  ;;  %v301_v5 = vld [vmem:[%s1512_s12 + $0x70] sm:$0xff] }
  0x7b   : > { %959 = vmatpush3.bf16.msra.mxu0 %v330_v22  ;;  %v309_v4 = vpack.c.bf16 %v300_v2, %v299_v1  ;;  %v302_v6 = vld [vmem:[%s1512_s12 + $0x78] sm:$0xff]  ;;  %v1541_v8 = vld [vmem:[%s1677_s3] ss:$0 sm:$0xff]  ;;  %s657_s12 = scalar_lea.sflag [#allocation4], %s1506_s14 }
  0x7c   : > { %991 = vmatpush3.bf16.msra.mxu1 %v354_v23  ;;  %960 = vmatprep.subr.bf16.mxu0 %v331_v31  ;;  %v310_v7 = vpack.c.bf16 %v302_v6, %v301_v5 }
  0x7d   : > { %992 = vmatprep.subr.bf16.mxu1 %v355_v32 }
  0x7f   : > { %961 = vmatpush3.bf16.msra.mxu0 %v331_v31 }
  0x80   : > { %993 = vmatpush3.bf16.msra.mxu1 %v355_v32  ;;  %962 = vmatprep.subr.bf16.mxu0 %v332_v37 }
  0x81   : > { %994 = vmatprep.subr.bf16.mxu1 %v356_v38 }
  0x83   : > { %963 = vmatpush3.bf16.msra.mxu0 %v332_v37 }
  0x84   : > { %995 = vmatpush3.bf16.msra.mxu1 %v356_v38  ;;  %964 = vmatprep.subr.bf16.mxu0 %v333_v43 }
  0x85   : > { %996 = vmatprep.subr.bf16.mxu1 %v357_v44 }
  0x87   : > { %965 = vmatpush3.bf16.msra.mxu0 %v333_v43 }
  0x88   : > { %997 = vmatpush3.bf16.msra.mxu1 %v357_v44  ;;  %966 = vmatprep.subr.bf16.mxu0 %v334_v49 }
  0x89   : > { %998 = vmatprep.subr.bf16.mxu1 %v358_v50 }
  0x8b   : > { %967 = vmatpush3.bf16.msra.mxu0 %v334_v49 }
  0x8c   : > { %999 = vmatpush3.bf16.msra.mxu1 %v358_v50 }
  0x8e   : > { %969 = vmatmul.mubr.bf16.vlgmr.msra.gmra.mrb[0].mxu0 %v304_v55 }
  0x8f   : > { %1001 = vmatmul.mubr.bf16.vlgmr.msra.gmra.mrb[0].mxu1 %v304_v55  ;;  %972 = vmatprep.mubr.bf16.mxu0 %v305_v56 }
  0x90   : > { %1004 = vmatprep.mubr.bf16.mxu1 %v305_v56 }
  0x96   : > { %973 = vmatmul.mubr.bf16.gmra.mrb[4].mxu0 %v306_v61 }
  0x97   : > { %1005 = vmatmul.mubr.bf16.gmra.mrb[4].mxu1 %v306_v61  ;;  %976 = vmatprep.mubr.bf16.mxu0 %v307_v62 }
  0x98   : > { %1008 = vmatprep.mubr.bf16.mxu1 %v307_v62 }
  0x9e   : > { %977 = vmatmul.mubr.bf16.gmra.mrb[8].mxu0 %v308_v3 }
  0x9f   : > { %1009 = vmatmul.mubr.bf16.gmra.mrb[8].mxu1 %v308_v3  ;;  %980 = vmatprep.mubr.bf16.mxu0 %v309_v4 }
  0xa0   : > { %1012 = vmatprep.mubr.bf16.mxu1 %v309_v4 }
  0xa6   : > { %981 = vmatmul.mubr.bf16.gmra.mrb[12].mxu0 %v310_v7 }
  0xa7   : > { %1013 = vmatmul.mubr.bf16.gmra.mrb[12].mxu1 %v310_v7 }
 0x161   : > { %v970_v9 = vpop.f32.mrb[0].mxu0 }
 0x162   : > { %v1002_v10 = vpop.f32.mrb[0].mxu1  ;;  %v393_v11 = vpop.f32.mrb[1].mxu0 }
 0x163   : > { %v586_v12 = vadd.f32 %v1002_v10, %v1541_v8  ;;  %v577_v13 = vpop.f32.mrb[1].mxu1  ;;  %v971_v14 = vpop.f32.mrb[2].mxu0 }
 0x164   : > { %v578_v15 = vadd.f32 %v1541_v8, %v577_v13  ;;  %v881_v16 = vpack.c.bf16 %v971_v14, %v970_v9  ;;  %v1003_v17 = vpop.f32.mrb[2].mxu1  ;;  %v396_v18 = vpop.f32.mrb[3].mxu0 }
 0x165   : > { %642 = vst [vmem:[%s1548_s16 + $0x10] sm:$0xff] %v586_v12  ;;  %v589_v19 = vadd.f32 %v1003_v17, %v1541_v8  ;;  %v876_v20 = vpack.c.bf16 %v396_v18, %v393_v11  ;;  %v580_v21 = vpop.f32.mrb[3].mxu1 }
 0x166   : > { %640 = vst [vmem:[%s1548_s16] sm:$0xff] %v578_v15  ;;  %913 = vst [vmem:[%s1553_s10 + $0x8] sm:$0xff] %v881_v16   ;;  %v581_v22 = vadd.f32 %v1541_v8, %v580_v21 }
 0x167   : > { %643 = vst [vmem:[%s1548_s16 + $0x18] sm:$0xff] %v589_v19  ;;  %877 = vst [vmem:[%s1553_s10] sm:$0xff] %v876_v20  }
 0x168   : > { %641 = vst [vmem:[%s1548_s16 + $0x8] sm:$0xff] %v581_v22 }
 0x169   : > { %v974_v23 = vpop.f32.mrb[4].mxu0 }
 0x16a   : > { %v1006_v24 = vpop.f32.mrb[4].mxu1  ;;  %v409_v25 = vpop.f32.mrb[5].mxu0 }
 0x16b   : > { %v602_v26 = vadd.f32 %v1006_v24, %v1541_v8  ;;  %v593_v27 = vpop.f32.mrb[5].mxu1  ;;  %v975_v28 = vpop.f32.mrb[6].mxu0 }
 0x16c   : > { %v594_v29 = vadd.f32 %v1541_v8, %v593_v27  ;;  %v891_v30 = vpack.c.bf16 %v975_v28, %v974_v23  ;;  %v1007_v31 = vpop.f32.mrb[6].mxu1  ;;  %v412_v32 = vpop.f32.mrb[7].mxu0 }
 0x16d   : > { %646 = vst [vmem:[%s1548_s16 + $0x30] sm:$0xff] %v602_v26  ;;  %v605_v33 = vadd.f32 %v1007_v31, %v1541_v8  ;;  %v886_v34 = vpack.c.bf16 %v412_v32, %v409_v25  ;;  %v596_v35 = vpop.f32.mrb[7].mxu1 }
 0x16e   : > { %644 = vst [vmem:[%s1548_s16 + $0x20] sm:$0xff] %v594_v29  ;;  %915 = vst [vmem:[%s1553_s10 + $0x18] sm:$0xff] %v891_v30   ;;  %v597_v36 = vadd.f32 %v1541_v8, %v596_v35 }
 0x16f   : > { %647 = vst [vmem:[%s1548_s16 + $0x38] sm:$0xff] %v605_v33  ;;  %914 = vst [vmem:[%s1553_s10 + $0x10] sm:$0xff] %v886_v34  }
 0x170   : > { %645 = vst [vmem:[%s1548_s16 + $0x28] sm:$0xff] %v597_v36 }
 0x171   : > { %v978_v37 = vpop.f32.mrb[8].mxu0 }
 0x172   : > { %v1010_v38 = vpop.f32.mrb[8].mxu1  ;;  %v425_v39 = vpop.f32.mrb[9].mxu0 }
 0x173   : > { %v618_v40 = vadd.f32 %v1010_v38, %v1541_v8  ;;  %v609_v41 = vpop.f32.mrb[9].mxu1  ;;  %v979_v42 = vpop.f32.mrb[10].mxu0 }
 0x174   : > { %v610_v43 = vadd.f32 %v1541_v8, %v609_v41  ;;  %v901_v44 = vpack.c.bf16 %v979_v42, %v978_v37  ;;  %v1011_v45 = vpop.f32.mrb[10].mxu1  ;;  %v428_v46 = vpop.f32.mrb[11].mxu0 }
 0x175   : > { %650 = vst [vmem:[%s1548_s16 + $0x50] sm:$0xff] %v618_v40  ;;  %v621_v47 = vadd.f32 %v1011_v45, %v1541_v8  ;;  %v896_v48 = vpack.c.bf16 %v428_v46, %v425_v39  ;;  %v612_v49 = vpop.f32.mrb[11].mxu1 }
 0x176   : > { %648 = vst [vmem:[%s1548_s16 + $0x40] sm:$0xff] %v610_v43  ;;  %917 = vst [vmem:[%s1553_s10 + $0x28] sm:$0xff] %v901_v44   ;;  %v613_v50 = vadd.f32 %v1541_v8, %v612_v49 }
 0x177   : > { %651 = vst [vmem:[%s1548_s16 + $0x58] sm:$0xff] %v621_v47  ;;  %916 = vst [vmem:[%s1553_s10 + $0x20] sm:$0xff] %v896_v48  }
 0x178   : > { %649 = vst [vmem:[%s1548_s16 + $0x48] sm:$0xff] %v613_v50 }
 0x179   : > { %v982_v51 = vpop.f32.mrb[12].mxu0 }
 0x17a   : > { %v1014_v52 = vpop.f32.mrb[12].mxu1  ;;  %v441_v53 = vpop.f32.mrb[13].mxu0 }
 0x17b   : > { %v634_v54 = vadd.f32 %v1014_v52, %v1541_v8  ;;  %v625_v55 = vpop.f32.mrb[13].mxu1  ;;  %v983_v56 = vpop.f32.mrb[14].mxu0 }
 0x17c   : > { %v626_v57 = vadd.f32 %v1541_v8, %v625_v55  ;;  %v911_v58 = vpack.c.bf16 %v983_v56, %v982_v51  ;;  %v1015_v59 = vpop.f32.mrb[14].mxu1  ;;  %v444_v60 = vpop.f32.mrb[15].mxu0 }
 0x17d   : > { %654 = vst [vmem:[%s1548_s16 + $0x70] sm:$0xff] %v634_v54  ;;  %v637_v61 = vadd.f32 %v1015_v59, %v1541_v8  ;;  %v906_v62 = vpack.c.bf16 %v444_v60, %v441_v53  ;;  %v628_v63 = vpop.f32.mrb[15].mxu1 }
 0x17e   : > { %652 = vst [vmem:[%s1548_s16 + $0x60] sm:$0xff] %v626_v57  ;;  %919 = vst [vmem:[%s1553_s10 + $0x38] sm:$0xff] %v911_v58   ;;  %v629_v0 = vadd.f32 %v1541_v8, %v628_v63 }
 0x17f   : > { %655 = vst [vmem:[%s1548_s16 + $0x78] sm:$0xff] %v637_v61  ;;  %918 = vst [vmem:[%s1553_s10 + $0x30] sm:$0xff] %v906_v62  }
 0x180   : > { %653 = vst [vmem:[%s1548_s16 + $0x68] sm:$0xff] %v629_v0 }
 0x181   : > { %1193 = shalt.err (!%p1190_p1)
}
 0x182   : > { %s1194_s16 = scalar_lea.hbm %s1588_s17, 1024  ;;  %s1198_s30 = scalar_lea.hbm %s1678_s4, 2048 }
 0x183   : > { %p1195_p13 = scmp.ne.s32.totalorder %s1588_s17, %s1194_s16  ;;  %p1199_p4 = scmp.lt.u32.totalorder %s1588_s17, %s1678_s4 }
 0x184   : > { %p1200_p5 = scmp.lt.u32.totalorder %s1198_s30, %s1194_s16  ;;  %p1202_p11 = scmp.lt.u32.totalorder %s1194_s16, %s1588_s17 }
 0x185   : > { %p1196_p6 = pnand %p1195_p13, %p1693_p0 }
 0x186   : > { %p1201_p8 = por %p1200_p5, %p1199_p4 }
 0x187   : > { %p1197_p10 = pneg %p1196_p6 }
 0x188   : > { %p1203_p2 = por %p1202_p11, %p1201_p8 }
 0x18a   : > { %p1204_p3 = pnand %p1203_p2, %p1197_p10 }
 0x18c   : > { %1207 = shalt.err (!%p1204_p3)
}
 0x18d   : > { %s1290_s6 = smov 64   ;;  %s1291_s24 = smov 4  }
 0x18e   : > { %1026 = dma.vmem_to_hbm [thread:$0]  (%p1693_p0), %s1582_s28, 1024, %s1588_s17, %s657_s12, %s1290_s6, %s1290_s6, %s1291_s24  }
 0x18f   : > { %s662_s26 = scalar_lea.sflag [#allocation10], %s1506_s14  ;;  %s1208_s15 = scalar_lea.vmem %s1603_s7, 2048 }
 0x190   : > { %p1209_p7 = scmp.ne.s32.totalorder %s1603_s7, %s1208_s15  ;;  %s1292_s13 = smov [#allocation9]  }
 0x191   : > { %s1212_s16 = sshll.u32 %s1292_s13, 4  ;;  %s1213_s16 = int_to_ptr.vmem [resolvable:$false] %s1212_s16 }
 0x192   : > { %p1210_p9 = pnand %p1209_p7, %p1693_p0  ;;  %s1214_s10 = scalar_lea.vmem %s1213_s16, 4096 }
 0x193   : > { %p1215_p1 = scmp.lt.s32.totalorder %s1603_s7, %s1213_s16  ;;  %p1216_p13 = scmp.lt.s32.totalorder %s1214_s10, %s1208_s15 }
 0x194   : > { %p1211_p12 = pneg %p1210_p9 }
 0x195   : > { %p1217_p6 = por %p1216_p13, %p1215_p1 }
 0x197   : > { %p1218_p10 = pnand %p1217_p6, %p1211_p12 }
 0x199   : > { %1221 = shalt.err (!%p1218_p10)
}
 0x19a   : > { %s1222_s28 = scalar_lea.hbm %s1598_s8, 2048  ;;  %s1226_s9 = scalar_lea.hbm %s1679_s5, 4096 }
 0x19b   : > { %p1223_p4 = scmp.ne.s32.totalorder %s1598_s8, %s1222_s28  ;;  %p1227_p11 = scmp.lt.u32.totalorder %s1598_s8, %s1679_s5 }
 0x19c   : > { %p1228_p2 = scmp.lt.u32.totalorder %s1226_s9, %s1222_s28  ;;  %p1230_p7 = scmp.lt.u32.totalorder %s1222_s28, %s1598_s8 }
 0x19d   : > { %p1224_p5 = pnand %p1223_p4, %p1693_p0 }
 0x19e   : > { %p1229_p3 = por %p1228_p2, %p1227_p11 }
 0x19f   : > { %p1225_p8 = pneg %p1224_p5 }
 0x1a0   : > { %p1231_p9 = por %p1230_p7, %p1229_p3 }
 0x1a2   : > { %p1232_p12 = pnand %p1231_p9, %p1225_p8 }
 0x1a4   : > { %1235 = shalt.err (!%p1232_p12)
}
 0x1a5   : > { %s1293_s22 = smov 128   ;;  %s1294_s6 = smov 8  }
 0x1a6   : > { %1027 = dma.vmem_to_hbm [thread:$0]  (%p1693_p0), %s1603_s7, 2048, %s1598_s8, %s662_s26, %s1293_s22, %s1293_s22, %s1294_s6  }
 0x1a7 PF: > { %s706_s24 = sand.u32 1, %s1270_s18   ;;  %p1694_p1 = scmp.ne.s32.totalorder %s1684_s25, 0 }
 0x1a8   : > { %p1695_p13 = scmp.ge.s32.totalorder %s1282_s21, 2  ;;  %s707_s15 = scalar_lea.sflag [#allocation4], %s706_s24 }
 0x1aa   : > { %p1042_p6 = pnand %p1695_p13, %p1694_p1 }
 0x1ac   : > { %1261 = dma.done.wait (!%p1042_p6), %s707_s15, 1024  }
 0x1ad   : > { %1263 = vsyncadd (!%p1042_p6), %s707_s15, 4294966272  ;;  %s716_s13 = scalar_lea.sflag [#allocation10], %s706_s24 }
 0x1ae   : > { %1265 = dma.done.wait (!%p1042_p6), %s716_s13, 2048  }
 0x1af   : > { %1267 = vsyncadd (!%p1042_p6), %s716_s13, 4294965248  ;;  %p23_p0 = scmp.ge.s32.totalorder %s1441_s29, 4   ;;  %s1696_s18 = smov %s1274_s19 }
 0x1b0   : > { %s1697_s19 = smov %s1278_s20  ;;  %s1698_s20 = smov %s1457_s27 }
 0x1b1   : > { %s1699_s21 = smov %s1441_s29  ;;  %25 = sbr.rel (!%p23_p0) target bundleno = 8 (0x8), region = 106 }
 0x1b8   :  { %721 = vsyncpa [#allocation3], 1 }
 0x1b9   :  { %723 = vsyncpa [#allocation3 + $0x1], 1 }
 0x1ba   :  { %724 = vsyncpa [#allocation6], 1 }
 0x1bb   :  { %725 = vsyncpa [#allocation4], 1 }
 0x1bc   :  { %727 = vsyncpa [#allocation4 + $0x1], 1 }
 0x1bd   :  { %728 = vsyncpa [#allocation10], 1 }
 0x1be   :  { %730 = vsyncpa [#allocation10 + $0x1], 1 }

</bundles_post_ra>
